<compile_context>
chip_gen: v5e
topology: v5e:2x2
jax: 0.10.0
libtpu: 0.0.40
codegen_flags: <defaults>
</compile_context>

<pallas_src>
import functools

import jax
import jax.numpy as jnp
from jax.experimental import pallas as pl
from jax.experimental.pallas import tpu as pltpu


def _round_up(a: int, m: int) -> int:
    return ((a + m - 1) // m) * m


def _vmem_budget_bytes() -> int:
    """Per-chip scoped-VMEM budget: 85% of the physical per-core VMEM."""
    try:
        cap = int(pltpu.get_tpu_info().vmem_capacity_bytes)
    except Exception:
        cap = 64 * 1024 * 1024  # conservative fallback (v7x per-TC VMEM)
    return int(0.85 * cap)


# ----------------------------------------------------------------------------------
# Fast path: whole vocab in one lane-dense block, weight resident & single-buffered.
# ----------------------------------------------------------------------------------
def _generator_kernel(x_ref, w_ref, b_ref, o_ref, *, bf16_exp):
    # x_ref: (tm, D) input dtype; w_ref: (D, V) compute dtype; b_ref: (1, V) f32;
    # o_ref: (tm, V) out dtype.
    x = x_ref[...].astype(w_ref.dtype)                 # in-kernel cast: no extra XLA pass
    logits = jnp.dot(x, w_ref[...], preferred_element_type=jnp.float32)
    logits = logits + b_ref[...]                       # f32 bias broadcast over rows
    m = jnp.max(logits, axis=-1, keepdims=True)
    shifted = logits - m
    if bf16_exp:
        # bf16 EUP (~2x on v6e/v7x); the reduction stays f32.
        p = jnp.exp(shifted.astype(jnp.bfloat16)).astype(jnp.float32)
    else:
        p = jnp.exp(shifted)
    lse = jnp.log(jnp.sum(p, axis=-1, keepdims=True))
    o_ref[...] = (shifted - lse).astype(o_ref.dtype)   # cast only at the store


# ----------------------------------------------------------------------------------
# Vocab-tiled path: vocab chunks streamed through VMEM, online (rescaling) log_softmax.
# Used when the resident weight (+ buffers) would not fit the per-chip VMEM budget.
# ----------------------------------------------------------------------------------
def _generator_kernel_vtiled(x_ref, w_ref, b_ref, o_ref,
                             logits_ref, m_ref, l_ref, *, bf16_exp):
    j = pl.program_id(1)
    nv = pl.num_programs(1)

    @pl.when(j == 0)
    def _():
        m_ref[...] = jnp.full(m_ref.shape, -jnp.inf, m_ref.dtype)
        l_ref[...] = jnp.zeros(l_ref.shape, l_ref.dtype)

    x = x_ref[...].astype(w_ref.dtype)
    logits = jnp.dot(x, w_ref[...], preferred_element_type=jnp.float32) + b_ref[...]
    logits_ref[j] = logits                             # cache chunk for final normalize

    m_prev = m_ref[...]
    m_new = jnp.maximum(m_prev, jnp.max(logits, axis=-1, keepdims=True))
    shifted = logits - m_new
    if bf16_exp:
        p = jnp.exp(shifted.astype(jnp.bfloat16)).astype(jnp.float32)
    else:
        p = jnp.exp(shifted)
    l_ref[...] = jnp.exp(m_prev - m_new) * l_ref[...] + jnp.sum(p, axis=-1, keepdims=True)
    m_ref[...] = m_new

    @pl.when(j == nv - 1)
    def _():
        lse = m_ref[...] + jnp.log(l_ref[...])
        nvt, _, tv = logits_ref.shape
        for jj in range(nvt):                          # static unroll, static lane slices
            o_ref[:, jj * tv:(jj + 1) * tv] = (logits_ref[jj] - lse).astype(o_ref.dtype)


def generator_forward(x, w, b, *, tm=256, tv=None,
                      compute_dtype=jnp.bfloat16,
                      out_dtype=jnp.bfloat16,
                      bf16_exp=True):
    """x: (B, S, D); w: (D, V) (transpose of PyTorch nn.Linear weight); b: (V,).

    Returns (B, S, V) log-probabilities == log_softmax(x @ w + b, axis=-1),
    stored in `out_dtype` (default bf16; pass jnp.float32 for a tighter-accuracy path,
    and compute_dtype=jnp.float32 for full-f32 MXU inputs).
    """
    B, S, D = x.shape
    V = w.shape[1]
    N = B * S

    # Row tile: multiple of 8 sublanes, never larger than the rounded-up row count.
    tm_eff = _round_up(min(tm, _round_up(N, 8)), 8)
    n_row = pl.cdiv(N, tm_eff)

    x2 = x.reshape(N, D)                                # free reshape; cast is in-kernel
    # No-op when the caller carries the weight in compute_dtype across calls.
    wc = w if w.dtype == compute_dtype else w.astype(compute_dtype)
    b2 = b.reshape(1, V).astype(jnp.float32)

    x_itm = jnp.dtype(x2.dtype).itemsize
    w_itm = jnp.dtype(wc.dtype).itemsize
    o_itm = jnp.dtype(out_dtype).itemsize

    budget = _vmem_budget_bytes()

    # Fast-path VMEM need: single-buffered weight + bias, double-buffered x / out
    # tiles, ~3 live (tm, V) f32 temporaries (logits / shifted / exp).
    fast_need = (D * V * w_itm + V * 4
                 + 2 * tm_eff * D * x_itm
                 + 2 * tm_eff * V * o_itm
                 + 3 * tm_eff * V * 4)

    cost = pl.CostEstimate(
        flops=2 * N * D * V,
        transcendentals=N * V,
        bytes_accessed=N * D * x_itm + D * V * w_itm + V * 4 + N * V * o_itm,
    )

    if tv is None and fast_need <= budget:
        # -------- resident-weight fast path --------
        out = pl.pallas_call(
            functools.partial(_generator_kernel, bf16_exp=bf16_exp),
            out_shape=jax.ShapeDtypeStruct((N, V), out_dtype),
            grid_spec=pltpu.PrefetchScalarGridSpec(
                num_scalar_prefetch=0,
                grid=(n_row,),
                in_specs=[
                    pl.BlockSpec((tm_eff, D), lambda i: (i, 0)),        # row tile of x
                    pl.BlockSpec((D, V), lambda i: (0, 0),              # resident weight
                                 pipeline_mode=pl.Buffered(1)),
                    pl.BlockSpec((1, V), lambda i: (0, 0),              # resident bias
                                 pipeline_mode=pl.Buffered(1)),
                ],
                out_specs=pl.BlockSpec((tm_eff, V), lambda i: (i, 0)),
            ),
            compiler_params=pltpu.CompilerParams(
                dimension_semantics=("parallel",),
                vmem_limit_bytes=budget,
            ),
            cost_estimate=cost,
        )(x2, wc, b2)
    else:
        # -------- vocab-tiled path (large vocab / v7x 64 MiB VMEM) --------
        if tv is None:
            tv = 128
            for cand in (2048, 1024, 512, 256, 128):
                if V % cand == 0:
                    tv = cand
                    break
        if V % tv != 0 or tv % 128 != 0:
            raise ValueError(f"vocab-tiled path needs V % tv == 0 and tv % 128 == 0 "
                             f"(got V={V}, tv={tv})")
        nvt = V // tv

        out = pl.pallas_call(
            functools.partial(_generator_kernel_vtiled, bf16_exp=bf16_exp),
            out_shape=jax.ShapeDtypeStruct((N, V), out_dtype),
            grid_spec=pltpu.PrefetchScalarGridSpec(
                num_scalar_prefetch=0,
                grid=(n_row, nvt),
                in_specs=[
                    pl.BlockSpec((tm_eff, D), lambda i, j: (i, 0)),     # row tile of x
                    pl.BlockSpec((D, tv), lambda i, j: (0, j)),         # vocab chunk of w
                    pl.BlockSpec((1, tv), lambda i, j: (0, j)),         # vocab chunk of b
                ],
                out_specs=pl.BlockSpec((tm_eff, V), lambda i, j: (i, 0)),
                scratch_shapes=[
                    pltpu.VMEM((nvt, tm_eff, tv), jnp.float32),         # cached chunk logits
                    pltpu.VMEM((tm_eff, 1), jnp.float32),               # running max
                    pltpu.VMEM((tm_eff, 1), jnp.float32),               # running sum-exp
                ],
            ),
            compiler_params=pltpu.CompilerParams(
                dimension_semantics=("parallel", "arbitrary"),
                vmem_limit_bytes=budget,
            ),
            cost_estimate=cost,
        )(x2, wc, b2)

    return out.reshape(B, S, V)


if __name__ == "__main__":
    # Small shapes consistent with the module: d_model=32, vocab=128, batch=2, seq=8.
    B, S, D, V = 2, 8, 32, 128
    key = jax.random.PRNGKey(0)
    kx, kw, kb, kw2, kb2 = jax.random.split(key, 5)

    x = jax.random.normal(kx, (B, S, D), dtype=jnp.float32)
    # Deterministic init mimicking nn.Linear's uniform(-1/sqrt(D), 1/sqrt(D)) scale.
    bound = 1.0 / (D ** 0.5)
    w = jax.random.uniform(kw, (D, V), minval=-bound, maxval=bound, dtype=jnp.float32)
    b = jax.random.uniform(kb, (V,), minval=-bound, maxval=bound, dtype=jnp.float32)

    ref = jax.nn.log_softmax(jnp.einsum("bsd,dv->bsv", x, w) + b, axis=-1)

    # 1) default path: bf16 MXU inputs, bf16 output (halves the dominant HBM write).
    out = jax.block_until_ready(generator_forward(x, w, b))
    assert out.shape == ref.shape and out.dtype == jnp.bfloat16
    assert jnp.allclose(out.astype(jnp.float32), ref, atol=6e-2, rtol=6e-2), \
        "mismatch vs reference (bf16 output)"

    # 2) f32-output path (tighter accuracy; matmul inputs still bf16).
    out32 = jax.block_until_ready(generator_forward(x, w, b, out_dtype=jnp.float32))
    assert jnp.allclose(out32, ref, atol=2e-2, rtol=2e-2), "mismatch vs reference (f32 out)"

    # 3) non-divisible row count -> masked partial last block (no pad / slice passes).
    x_odd = x[:, :5, :]
    out_odd = jax.block_until_ready(generator_forward(x_odd, w, b, out_dtype=jnp.float32))
    ref_odd = jax.nn.log_softmax(jnp.einsum("bsd,dv->bsv", x_odd, w) + b, axis=-1)
    assert jnp.allclose(out_odd, ref_odd, atol=2e-2, rtol=2e-2), "mismatch (partial block)"

    # 4) vocab-tiled path (taken automatically when the resident weight would not fit
    #    the per-chip VMEM budget; forced here via tv to exercise it at small scale).
    V2 = 256
    w2 = jax.random.uniform(kw2, (D, V2), minval=-bound, maxval=bound, dtype=jnp.float32)
    b2 = jax.random.uniform(kb2, (V2,), minval=-bound, maxval=bound, dtype=jnp.float32)
    out_vt = jax.block_until_ready(
        generator_forward(x, w2, b2, tv=128, out_dtype=jnp.float32))
    ref_vt = jax.nn.log_softmax(jnp.einsum("bsd,dv->bsv", x, w2) + b2, axis=-1)
    assert jnp.allclose(out_vt, ref_vt, atol=2e-2, rtol=2e-2), "mismatch (vocab-tiled)"

    print("KERNEL_OK")
</pallas_src>

<mosaic_0001>
module attributes {stable_mosaic.version = 11 : i64} {
  func.func @_generator_kernel(%arg0: i32, %arg1: memref<16x32xf32, #tpu.memory_space<vmem>>, %arg2: memref<32x128xbf16, #tpu.memory_space<vmem>>, %arg3: memref<1x128xf32, #tpu.memory_space<vmem>>, %arg4: memref<16x128xbf16, #tpu.memory_space<vmem>>) attributes {dimension_semantics = [#tpu.dimension_semantics<parallel>], iteration_bounds = array<i64: 1>, scalar_prefetch = 0 : i64, scratch_operands = 0 : i64, tpu.core_type = #tpu.core_type<tc>, window_params = [{transform_indices = @transform_0, window_bounds = array<i64: 16, 32>}, {pipeline_mode = #tpu.pipeline_mode<synchronous>, transform_indices = @transform_1, window_bounds = array<i64: 32, 128>}, {pipeline_mode = #tpu.pipeline_mode<synchronous>, transform_indices = @transform_2, window_bounds = array<i64: 1, 128>}, {transform_indices = @transform_3, window_bounds = array<i64: 16, 128>}]} {
    %c0 = arith.constant 0 : index
    %c0_0 = arith.constant 0 : index
    %0 = vector.load %arg1[%c0, %c0_0] : memref<16x32xf32, #tpu.memory_space<vmem>>, vector<16x32xf32>
    %1 = arith.truncf %0 : vector<16x32xf32> to vector<16x32xbf16>
    %c0_1 = arith.constant 0 : index
    %c0_2 = arith.constant 0 : index
    %2 = vector.load %arg2[%c0_1, %c0_2] : memref<32x128xbf16, #tpu.memory_space<vmem>>, vector<32x128xbf16>
    %cst = arith.constant dense<0.000000e+00> : vector<16x128xf32>
    %3 = tpu.matmul %1, %2, %cst {dimension_numbers = #tpu.dot_dimension_numbers<[1], [0], [0], [1], [0, 0, 1, 1], [], []>} : vector<16x32xbf16>, vector<32x128xbf16>, vector<16x128xf32> -> vector<16x128xf32>
    %c0_3 = arith.constant 0 : index
    %c0_4 = arith.constant 0 : index
    %4 = vector.load %arg3[%c0_3, %c0_4] : memref<1x128xf32, #tpu.memory_space<vmem>>, vector<1x128xf32>
    %5 = vector.broadcast %4 : vector<1x128xf32> to vector<16x128xf32>
    %6 = arith.addf %3, %5 : vector<16x128xf32>
    %cst_5 = arith.constant dense<0xFF800000> : vector<16xf32>
    %7 = vector.multi_reduction <maximumf>, %6, %cst_5 [1] : vector<16x128xf32> to vector<16xf32>
    %8 = vector.shape_cast %7 : vector<16xf32> to vector<16x1xf32>
    %9 = vector.broadcast %8 : vector<16x1xf32> to vector<16x128xf32>
    %10 = arith.subf %6, %9 : vector<16x128xf32>
    %11 = arith.truncf %10 : vector<16x128xf32> to vector<16x128xbf16>
    %12 = math.exp %11 : vector<16x128xbf16>
    %13 = arith.extf %12 : vector<16x128xbf16> to vector<16x128xf32>
    %cst_6 = arith.constant dense<0.000000e+00> : vector<16xf32>
    %14 = vector.multi_reduction <add>, %13, %cst_6 [1] : vector<16x128xf32> to vector<16xf32>
    %15 = vector.shape_cast %14 : vector<16xf32> to vector<16x1xf32>
    %16 = math.log %15 : vector<16x1xf32>
    %17 = vector.broadcast %16 : vector<16x1xf32> to vector<16x128xf32>
    %18 = arith.subf %10, %17 : vector<16x128xf32>
    %19 = arith.truncf %18 : vector<16x128xf32> to vector<16x128xbf16>
    %c0_7 = arith.constant 0 : index
    %c0_8 = arith.constant 0 : index
    %20 = vector.load %arg4[%c0_7, %c0_8] : memref<16x128xbf16, #tpu.memory_space<vmem>>, vector<16x128xbf16>
    tpu.vector_store %arg4[%c0_7, %c0_8], %19 {strides = array<i32>} : memref<16x128xbf16, #tpu.memory_space<vmem>>, vector<16x128xbf16>,
    return
  }
  func.func @transform_0(%arg0: i32) -> (i32, i32) {
    %c0_i32 = arith.constant 0 : i32
    %c0_i32_0 = arith.constant 0 : i32
    return %arg0, %c0_i32 : i32, i32
  }
  func.func @transform_1(%arg0: i32) -> (i32, i32) {
    %c0_i32 = arith.constant 0 : i32
    %c0_i32_0 = arith.constant 0 : i32
    %c0_i32_1 = arith.constant 0 : i32
    return %c0_i32, %c0_i32_0 : i32, i32
  }
  func.func @transform_2(%arg0: i32) -> (i32, i32) {
    %c0_i32 = arith.constant 0 : i32
    %c0_i32_0 = arith.constant 0 : i32
    %c0_i32_1 = arith.constant 0 : i32
    return %c0_i32, %c0_i32_0 : i32, i32
  }
  func.func @transform_3(%arg0: i32) -> (i32, i32) {
    %c0_i32 = arith.constant 0 : i32
    %c0_i32_0 = arith.constant 0 : i32
    return %arg0, %c0_i32 : i32, i32
  }
}

</mosaic_0001>

<bundles_post_ra>
// kernel: tpu_custom_call.1
= control target key start
LH: loop header
LB: loop body
LE: loop exit
PB: predicated region body
PF: predicated region fallthrough
CT: control target
= control target key end

     0   :  { %8 = vsyncpa [#allocation3], 0  ;;  %s294_s0 = inlined_call_operand.hbm [shape: f32[16,32], index: 0, kind: input, shape index: {}]   ;;  %s295_s1 = inlined_call_operand.hbm [shape: bf16[32,128], index: 1, kind: input, shape index: {}]   ;;  %s296_s2 = inlined_call_operand.vmem [shape: f32[1,128], index: 2, kind: input, shape index: {}]   ;;  %s297_s3 = inlined_call_operand.hbm [shape: bf16[16,128], index: 3, kind: output, shape index: {}]  }
   0x1   :  { %9 = vsyncpa [#allocation6], 0 }
   0x2   :  { %10 = vsyncpa [#allocation4], 0  ;;  %s15_s14 = sshll.u32 %s294_s0, 4  ;;  %s249_s15 = smov [#allocation2]   ;;  %s16_s14 = int_to_ptr.hbm [resolvable:$true] %s15_s14 }
   0x3   :  { %s17_s16 = sshll.u32 %s249_s15, 4  ;;  %s28_s19 = sshll.u32 %s295_s1, 4  ;;  %s18_s16 = int_to_ptr.vmem [resolvable:$true] %s17_s16  ;;  %s29_s19 = int_to_ptr.hbm [resolvable:$true] %s28_s19 }
   0x4   :  { %s250_s20 = smov 128   ;;  %s251_s21 = smov 8  }
   0x5   :  { %23 = dma.hbm_to_vmem [thread:$0]  %s16_s14, 256, %s18_s16, [#allocation3], %s250_s20, %s250_s20, %s251_s21  }
   0x6   :  { %s252_s22 = smov [#allocation5]   ;;  %s253_s24 = smov 64  }
   0x7   :  { %s30_s23 = sshll.u32 %s252_s22, 4  ;;  %s254_s25 = smov 4   ;;  %s31_s23 = int_to_ptr.vmem [resolvable:$true] %s30_s23 }
   0x8   :  { %36 = dma.hbm_to_vmem [thread:$0]  %s29_s19, 256, %s31_s23, [#allocation6], %s253_s24, %s253_s24, %s254_s25  }
   0x9   :  { %243 = dma.done.wait [#allocation3], 256  }
   0xa   :  { %244 = vsyncadd [#allocation3], 4294967040 }
   0xb   :  { %245 = dma.done.wait [#allocation6], 256  }
   0xc   :  { %246 = vsyncadd [#allocation6], 4294967040  ;;  %v149_v0 = vld [vmem:[#allocation5 + $0x8] sm:$0xff]  ;;  %v148_v1 = vld [vmem:[#allocation5] sm:$0xff]  ;;  %vm71_vm0 = vcmask 261120   ;;  %s125_s29 = sshll.u32 %s297_s3, 4  ;;  %s126_s29 = int_to_ptr.hbm [resolvable:$true] %s125_s29 }
   0xd   :  { %81 = vmatpush.bf16.msra.mxu0 %v149_v0  ;;  %v48_v2 = vld [vmem:[#allocation2] sm:$0xff]  ;;  %v49_v3 = vld [vmem:[#allocation2 + $0x8] sm:$0xff] }
   0xe   :  { %v50_v4 = vpack.c.bf16 %v49_v3, %v48_v2  ;;  %v162_v5 = vld [vmem:[%s296_s2] ss:$0 sm:$0xff]  ;;  %s255_s2 = smov [#allocation7]  }
   0xf   :  { %s123_s26 = sshll.u32 %s255_s2, 4  ;;  %s124_s26 = int_to_ptr.vmem [resolvable:$true] %s123_s26 }
  0x11   :  { %82 = vmatpush.bf16.msra.mxu0 %v148_v1 }
  0x14   :  { %147 = vmatmul.msk.bf16.vlgmr.msra.gmra.mxu0 %vm71_vm0, %v50_v4 }
  0x91   :  { %v84_v6 = vpop.f32.mrf.mxu0 }
  0x92   :  { %v85_v7 = vadd.f32 %v162_v5, %v84_v6 }
  0x94   :  { %89 = vmax.xlane.f32.xlu0 %v85_v7 }
  0x99   :  { %v86_v8 = vpop.f32.mrf.mxu0 }
  0x9a   :  { %v87_v9 = vadd.f32 %v162_v5, %v86_v8 }
  0x9c   :  { %91 = vmax.xlane.f32.xlu0 %v87_v9 }
 0x107   :  { %v90_v10 = vpop.xlane.xlu0 %89 }
 0x108   :  { %v93_v12 = vsub.f32 %v85_v7, %v90_v10 }
 0x10f   :  { %v92_v11 = vpop.xlane.xlu0 %91 }
 0x110   :  { %v94_v13 = vsub.f32 %v87_v9, %v92_v11 }
 0x112   :  { %v95_v14 = vpack.c.bf16 %v94_v13, %v93_v12 }
 0x114   :  { %v96_v15 = vunpack.c.l.bf16 %v95_v14  ;;  %v97_v16 = vunpack.c.h.bf16 %v95_v14 }
 0x116   :  { %v98_v17 = vmul.f32 1.442695, %v96_v15  ;;  %v100_v18 = vmul.f32 1.442695, %v97_v16 }
 0x118   :  { %163 = vpow2.f32 %v98_v17 }
 0x119   :  { %165 = vpow2.f32 %v100_v18 }
 0x11e   :  { %v164_v19 = vpop.eup %163 }
 0x11f   :  { %v166_v20 = vpop.eup %165 }
 0x120   :  { %v102_v21 = vpack.c.bf16 %v166_v20, %v164_v19 }
 0x122   :  { %v103_v22 = vunpack.c.l.bf16 %v102_v21  ;;  %v104_v23 = vunpack.c.h.bf16 %v102_v21 }
 0x124   :  { %105 = vadd.xlane.f32.xlu1 %v103_v22 }
 0x12c   :  { %107 = vadd.xlane.f32.xlu1 %v104_v23 }
 0x197   :  { %v106_v24 = vpop.xlane.xlu1 %105 }
 0x198   :  { %167 = vlog2.f32 %v106_v24 }
 0x19e   :  { %v168_v26 = vpop.eup %167 }
 0x19f   :  { %v108_v25 = vpop.xlane.xlu1 %107  ;;  %v110_v27 = vmul.f32 0.6931472, %v168_v26 }
 0x1a0   :  { %169 = vlog2.f32 %v108_v25 }
 0x1a1   :  { %v113_v30 = vsub.f32 %v93_v12, %v110_v27 }
 0x1a6   :  { %v170_v28 = vpop.eup %169 }
 0x1a7   :  { %v112_v29 = vmul.f32 0.6931472, %v170_v28 }
 0x1a9   :  { %v114_v31 = vsub.f32 %v94_v13, %v112_v29 }
 0x1ab   :  { %v153_v32 = vpack.c.bf16 %v114_v31, %v113_v30 }
 0x1ad   :  { %154 = vst [vmem:[#allocation7] sm:$0xff] %v153_v32  }
 0x1ae   :  { %131 = dma.vmem_to_hbm [thread:$0]  %s124_s26, 128, %s126_s29, [#allocation4], %s253_s24, %s253_s24, %s254_s25  }
 0x1af   :  { %247 = dma.done.wait [#allocation4], 128  }
 0x1b0   :  { %248 = vsyncadd [#allocation4], 4294967168 }
 0x1b1   :  { %136 = vsyncpa [#allocation3], 1 }
 0x1b2   :  { %137 = vsyncpa [#allocation6], 1 }
 0x1b3   :  { %138 = vsyncpa [#allocation4], 1 }

</bundles_post_ra>
